<compile_context>
chip_gen: v7x
topology: tpu7x:2x2x1
jax: 0.10.0
libtpu: 0.0.40
codegen_flags: <defaults>
</compile_context>

<pallas_src>
import jax
import jax.numpy as jnp
from jax.experimental import pallas as pl
from jax.experimental.pallas import tpu as pltpu


def _round_up(x, m):
    return ((x + m - 1) // m) * m


def _cdiv(a, b):
    return (a + b - 1) // b


def _onehot_gather_kernel(labels_ref, w_ref, o_ref):
    # labels_ref : (TM, 1)      int32   clamped label ids for this label tile
    # w_ref      : (TK, F_pad)  float32 one contraction tile of the table
    # o_ref      : (TM, F_pad)  float32 output block, resident across k axis
    k = pl.program_id(1)

    @pl.when(k == 0)
    def _():
        o_ref[...] = jnp.zeros_like(o_ref)

    tm = labels_ref.shape[0]
    tk = w_ref.shape[0]

    lbl = labels_ref[...]                                            # (TM, 1)
    col = k * tk + jax.lax.broadcasted_iota(jnp.int32, (tm, tk), 1)  # (TM, TK)
    one_hot = (col == lbl).astype(w_ref.dtype)                       # (TM, TK)

    # Exact gather: each one-hot row selects exactly one table row on the MXU.
    o_ref[...] += jnp.dot(
        one_hot,
        w_ref[...],
        preferred_element_type=jnp.float32,
        precision=jax.lax.Precision.HIGHEST,
    )


class LabelEncoderPallas:
    """Embedding gather matching `nn.Embedding.weight[labels]`."""

    def __init__(self, weight, *, tm=512, max_k_tile=512, small_n_threshold=8):
        weight = jnp.asarray(weight)
        self.num_classes, self.num_feats = weight.shape
        self.tm = max(8, _round_up(tm, 8))
        self.small_n_threshold = small_n_threshold
        self.weight = weight  # unpadded copy for the tiny-n fast path

        # --- pad the table ONCE (hoisted out of the per-call forward) ---
        max_k_tile = max(128, _round_up(max_k_tile, 128))
        c_128 = _round_up(max(self.num_classes, 1), 128)
        self.tk = min(c_128, max_k_tile)                  # contraction tile
        self.c_pad = _round_up(self.num_classes, self.tk)
        self.num_k_tiles = self.c_pad // self.tk
        self.f_pad = _round_up(self.num_feats, 128)       # lane-dense output

        self.w_padded = (
            jnp.zeros((self.c_pad, self.f_pad), weight.dtype)
            .at[: self.num_classes, : self.num_feats]
            .set(weight)
        )

    def __call__(self, labels):
        return self.forward(labels)

    def calc_emb(self, labels):
        return self.forward(labels)

    def forward(self, labels):
        labels = jnp.asarray(labels)
        out_shape = labels.shape + (self.num_feats,)
        labels_flat = labels.reshape(-1).astype(jnp.int32)
        n = labels_flat.shape[0]

        if n == 0:
            return jnp.zeros(out_shape, self.w_padded.dtype)

        # Bounds-safety: PyTorch raises on OOB; we clamp instead of OOB reads.
        labels_flat = jnp.clip(labels_flat, 0, self.num_classes - 1)

        # Tiny label tensors: pallas_call fixed cost dominates -> plain gather.
        if n < self.small_n_threshold:
            return jnp.take(self.weight, labels_flat, axis=0).reshape(out_shape)

        # --- label tile sizing: big tiles, but >= 2 tiles for v7x megacore ---
        tm_eff = min(self.tm, _round_up(n, 8))
        while tm_eff > 8 and _cdiv(n, tm_eff) < 2:
            tm_eff = max(8, _round_up(_cdiv(tm_eff, 2), 8))
        n_pad = _round_up(n, tm_eff)
        num_tiles = n_pad // tm_eff

        labels_padded = (
            jnp.zeros((n_pad, 1), jnp.int32).at[:n, 0].set(labels_flat)
        )

        # --- weight BlockSpec: single-buffer when the whole table is one tile ---
        if self.num_k_tiles == 1:
            w_spec = pl.BlockSpec(
                (self.tk, self.f_pad),
                lambda i, k: (0, 0),
                pipeline_mode=pl.Buffered(1),
            )
        else:
            w_spec = pl.BlockSpec((self.tk, self.f_pad), lambda i, k: (k, 0))

        # --- explicit VMEM budget (table + output double-buffer + labels + slack) ---
        table_bufs = 1 if self.num_k_tiles == 1 else 2
        vmem_bytes = (
            table_bufs * self.tk * self.f_pad * 4
            + 2 * tm_eff * self.f_pad * 4
            + 2 * tm_eff * 128 * 4           # (TM, 1) label blocks, lane-padded
            + (2 << 20)                      # internal scratch / slack
        )
        vmem_limit = int(min(56 << 20, max(32 << 20, vmem_bytes)))

        grid_spec = pltpu.PrefetchScalarGridSpec(
            num_scalar_prefetch=0,
            grid=(num_tiles, self.num_k_tiles),
            in_specs=[
                # Per-tile label ids: (TM, 1) block; last dim equals the full
                # array dim (1), TM is a multiple of 8 -> (8,128) rule holds.
                pl.BlockSpec((tm_eff, 1), lambda i, k: (i, 0)),
                w_spec,
            ],
            out_specs=pl.BlockSpec((tm_eff, self.f_pad), lambda i, k: (i, 0)),
        )

        out_padded = pl.pallas_call(
            _onehot_gather_kernel,
            out_shape=jax.ShapeDtypeStruct((n_pad, self.f_pad), self.w_padded.dtype),
            grid_spec=grid_spec,
            compiler_params=pltpu.CompilerParams(
                dimension_semantics=("parallel", "arbitrary"),
                vmem_limit_bytes=vmem_limit,
            ),
        )(labels_padded, self.w_padded)

        return out_padded[:n, : self.num_feats].reshape(out_shape)


if __name__ == "__main__":
    key = jax.random.PRNGKey(0)
    k1, k2, k3, k4 = jax.random.split(key, 4)

    # Case 1: small table -> single k-tile, VMEM-resident, single-buffered.
    num_classes, num_feats = 10, 96
    weight = jax.random.uniform(k1, (num_classes, num_feats), dtype=jnp.float32)
    enc = LabelEncoderPallas(weight)
    labels = jax.random.randint(k2, (2, 8), 0, num_classes, dtype=jnp.int32)
    out = jax.block_until_ready(enc(labels))
    ref = weight[labels]
    assert out.shape == (2, 8, num_feats), out.shape
    assert jnp.allclose(out, ref), "case 1 mismatch vs reference gather"

    # Case 2: class dim spans multiple contraction tiles (accumulation path).
    num_classes2, num_feats2 = 200, 64
    weight2 = jax.random.uniform(k3, (num_classes2, num_feats2), dtype=jnp.float32)
    enc2 = LabelEncoderPallas(weight2, max_k_tile=128)
    labels2 = jax.random.randint(k4, (3, 5), 0, num_classes2, dtype=jnp.int32)
    out2 = jax.block_until_ready(enc2(labels2))
    ref2 = weight2[labels2]
    assert out2.shape == (3, 5, num_feats2), out2.shape
    assert jnp.allclose(out2, ref2), "case 2 mismatch vs reference gather"

    print("KERNEL_OK")
</pallas_src>

<mosaic_0001>
module attributes {stable_mosaic.version = 11 : i64} {
  func.func @_onehot_gather_kernel(%arg0: i32, %arg1: i32, %arg2: memref<8x1xi32, #tpu.memory_space<vmem>>, %arg3: memref<128x128xf32, #tpu.memory_space<vmem>>, %arg4: memref<8x128xf32, #tpu.memory_space<vmem>>) attributes {dimension_semantics = [#tpu.dimension_semantics<parallel>, #tpu.dimension_semantics<arbitrary>], iteration_bounds = array<i64: 2, 1>, scalar_prefetch = 0 : i64, scratch_operands = 0 : i64, tpu.core_type = #tpu.core_type<tc>, window_params = [{transform_indices = @transform_0, window_bounds = array<i64: 8, 1>}, {pipeline_mode = #tpu.pipeline_mode<synchronous>, transform_indices = @transform_1, window_bounds = array<i64: 128, 128>}, {transform_indices = @transform_2, window_bounds = array<i64: 8, 128>}]} {
    %c0_i32 = arith.constant 0 : i32
    %0 = arith.cmpi eq, %arg1, %c0_i32 : i32
    %1 = arith.extui %0 : i1 to i32
    %c0_i32_0 = arith.constant 0 : i32
    %2 = arith.cmpi ne, %1, %c0_i32_0 : i32
    scf.if %2 {
      %cst_8 = arith.constant 0.000000e+00 : f32
      %17 = vector.broadcast %cst_8 : f32 to vector<8x128xf32>
      %c0_9 = arith.constant 0 : index
      %c0_10 = arith.constant 0 : index
      %18 = vector.load %arg4[%c0_9, %c0_10] : memref<8x128xf32, #tpu.memory_space<vmem>>, vector<8x128xf32>
      tpu.vector_store %arg4[%c0_9, %c0_10], %17 {strides = array<i32>} : memref<8x128xf32, #tpu.memory_space<vmem>>, vector<8x128xf32>,
    } else {
    }
    %c0 = arith.constant 0 : index
    %c0_1 = arith.constant 0 : index
    %3 = vector.load %arg2[%c0, %c0_1] : memref<8x1xi32, #tpu.memory_space<vmem>>, vector<8x1xi32>
    %c128_i32 = arith.constant 128 : i32
    %4 = arith.muli %arg1, %c128_i32 : i32
    %5 = tpu.iota {dimensions = array<i32: 1>} : vector<8x128xi32>
    %6 = vector.broadcast %4 : i32 to vector<8x128xi32>
    %7 = arith.addi %6, %5 : vector<8x128xi32>
    %8 = vector.broadcast %3 : vector<8x1xi32> to vector<8x128xi32>
    %9 = arith.cmpi eq, %7, %8 : vector<8x128xi32>
    %10 = arith.extui %9 : vector<8x128xi1> to vector<8x128xi32>
    %11 = arith.sitofp %10 : vector<8x128xi32> to vector<8x128xf32>
    %c0_2 = arith.constant 0 : index
    %c0_3 = arith.constant 0 : index
    %12 = vector.load %arg4[%c0_2, %c0_3] : memref<8x128xf32, #tpu.memory_space<vmem>>, vector<8x128xf32>
    %c0_4 = arith.constant 0 : index
    %c0_5 = arith.constant 0 : index
    %13 = vector.load %arg3[%c0_4, %c0_5] : memref<128x128xf32, #tpu.memory_space<vmem>>, vector<128x128xf32>
    %cst = arith.constant dense<0.000000e+00> : vector<8x128xf32>
    %14 = tpu.matmul %11, %13, %cst {dimension_numbers = #tpu.dot_dimension_numbers<[1], [0], [0], [1], [0, 0, 1, 1], [], []>, precision = #tpu.contract_precision<fp32>} : vector<8x128xf32>, vector<128x128xf32>, vector<8x128xf32> -> vector<8x128xf32>
    %15 = arith.addf %12, %14 : vector<8x128xf32>
    %c0_6 = arith.constant 0 : index
    %c0_7 = arith.constant 0 : index
    %16 = vector.load %arg4[%c0_6, %c0_7] : memref<8x128xf32, #tpu.memory_space<vmem>>, vector<8x128xf32>
    tpu.vector_store %arg4[%c0_6, %c0_7], %15 {strides = array<i32>} : memref<8x128xf32, #tpu.memory_space<vmem>>, vector<8x128xf32>,
    return
  }
  func.func @transform_0(%arg0: i32, %arg1: i32) -> (i32, i32) {
    %c0_i32 = arith.constant 0 : i32
    %c0_i32_0 = arith.constant 0 : i32
    return %arg0, %c0_i32 : i32, i32
  }
  func.func @transform_1(%arg0: i32, %arg1: i32) -> (i32, i32) {
    %c0_i32 = arith.constant 0 : i32
    %c0_i32_0 = arith.constant 0 : i32
    %c0_i32_1 = arith.constant 0 : i32
    return %c0_i32, %c0_i32_0 : i32, i32
  }
  func.func @transform_2(%arg0: i32, %arg1: i32) -> (i32, i32) {
    %c0_i32 = arith.constant 0 : i32
    %c0_i32_0 = arith.constant 0 : i32
    return %arg0, %c0_i32 : i32, i32
  }
}

</mosaic_0001>

<bundles_post_ra>
// kernel: tpu_custom_call.1
= control target key start
LH: loop header
LB: loop body
LE: loop exit
PB: predicated region body
PF: predicated region fallthrough
CT: control target
= control target key end

     0   :  { %7 = vsyncpa [#allocation3], 0  ;;  %s2098_s0 = inlined_call_operand.vmem [shape: s32[16,1], index: 0, kind: input, shape index: {}]   ;;  %s2099_s1 = inlined_call_operand.hbm [shape: f32[128,128], index: 1, kind: input, shape index: {}]   ;;  %s2100_s2 = inlined_call_operand.hbm [shape: f32[16,128], index: 2, kind: output, shape index: {}]  }
   0x1   :  { %8 = vsyncpa [#allocation4], 0 }
   0x2   :  { %10 = vsyncpa [#allocation4 + $0x1], 0  ;;  %s1619_s9 = smov 0   ;;  %s1621_s10 = smov 0  }
   0x3   :  { %s1623_s11 = smov 0   ;;  %s1625_s12 = smov 0  }
   0x4   :  { %s1627_s13 = smov 0   ;;  %s1629_s14 = smov 0  }
   0x5 LB: > { %s936_s15 = sadd.s32 4294967295, %s1593_s14   ;;  %s937_s16 = sadd.s32 4294967294, %s1593_s14   ;;  %s1593_s14 = sphi %s1629_s14, %s16_s14   ;;  %s1589_s13 = sphi %s1627_s13, %s2118_s13   ;;  %s1585_s12 = sphi %s1625_s12, %s2117_s12   ;;  %s1581_s11 = sphi %s1623_s11, %s2116_s11   ;;  %s1577_s10 = sphi %s1621_s10, %s2115_s10   ;;  %s1573_s9 = sphi %s1619_s9, %s2114_s9  }
   0x6   : > { %s28_s17 = sadd.s32 1, %s1589_s13  ;;  %s82_s18 = sadd.s32 1, %s1581_s11 }
   0x7   : > { %p30_p0 = scmp.ge.s32.totalorder %s28_s17, 2  ;;  %p92_p1 = scmp.ne.s32.totalorder %s1581_s11, %s1577_s10 }
   0x8   : > { %p93_p2 = scmp.eq.s32.totalorder %s936_s15, 1  ;;  %p98_p3 = scmp.ne.s32.totalorder %s1577_s10, %s1573_s9 }
   0x9   : > { %s2120_s17 = smov (%p30_p0, %s28_s17), 0  ;;  %p99_p5 = scmp.eq.s32.totalorder %s937_s16, 1 }
   0xa   : > { %p1659_p4 = por %p93_p2, %p92_p1  ;;  %s79_s20 = ssub.s32 %s1589_s13, %s2120_s17 }
   0xb   : > { %p938_p6 = scmp.ge.s32.totalorder %s1593_s14, 1  ;;  %p80_p7 = scmp.eq.s32.totalorder %s79_s20, 0 }
   0xc   : > { %s2105_s19 = scalar_select %p1659_p4, 1, 0 }
   0xd   : > { %p1666_p8 = por %p99_p5, %p98_p3  ;;  %p106_p9 = scmp.lt.s32.totalorder %s1593_s14, 3 }
   0xe   : > { %s1672_s22 = scalar_select %p80_p7, %s1581_s11, %s82_s18  }
   0xf   : > { %s2106_s21 = scalar_select %p1666_p8, 1, 0 }
  0x10   : > { %p1674_p10 = pnand %p938_p6, %p106_p9  ;;  %p1678_p11 = scmp.eq.s32.totalorder %s936_s15, 0 }
  0x11   : > { %s1595_s25 = smov [#allocation2]   ;;  %s1483_s30 = scalar_lea.hbm %s2099_s1, 2048 }
  0x12   : > { %s2107_s23 = scalar_select %p1674_p10, 1, 0 }
  0x13   : > { %s2108_s24 = scalar_select %p1678_p11, 1, 0 }
  0x14   : > { %p1415_p12 = pneg %p1674_p10  ;;  %s118_s26 = sshll.u32 %s1595_s25, 4  ;;  %s119_s26 = int_to_ptr.vmem [resolvable:$true] %s118_s26 }
  0x15   : > { %p1484_p0 = scmp.ne.s32.totalorder %s2099_s1, %s1483_s30  ;;  %p1490_p5 = scmp.lt.u32.totalorder %s1483_s30, %s2099_s1 }
  0x16   : > { %p1686_p13 = pnand %p1678_p11, %p1415_p12 }
  0x18   : > { %p1485_p1 = pneg %p1686_p13 }
  0x1a   : > { %p1486_p2 = pnand %p1485_p1, %p1484_p0 }
  0x1c   : > { %p1487_p3 = pneg %p1486_p2 }
  0x1e   : > { %p1492_p6 = pnand %p1490_p5, %p1487_p3 }
  0x20   : > { %1495 = shalt.err (!%p1492_p6)
}
  0x21   : > { %s1496_s7 = scalar_lea.vmem %s119_s26, 2048  ;;  %p1504_p8 = scmp.lt.s32.totalorder %s119_s26, %s119_s26 }
  0x22   : > { %p1497_p7 = scmp.ne.s32.totalorder %s119_s26, %s1496_s7  ;;  %p1505_p4 = scmp.lt.s32.totalorder %s1496_s7, %s1496_s7 }
  0x24   : > { %p1499_p9 = pnand %p1497_p7, %p1485_p1  ;;  %p1506_p11 = por %p1505_p4, %p1504_p8 }
  0x26   : > { %p1500_p12 = pneg %p1499_p9 }
  0x28   : > { %p1507_p10 = pnand %p1506_p11, %p1500_p12 }
  0x2a   : > { %1510 = shalt.err (!%p1507_p10)
}
  0x2b   : > { %s1596_s8 = smov 128   ;;  %s1597_s15 = smov 8  }
  0x2c   : > { %1418 = dma.hbm_to_vmem [thread:$0]  (!%p1686_p13), %s2099_s1, 2048, %s119_s26, [#allocation3], %s1596_s8, %s1596_s8, %s1597_s15  }
  0x2d   : > { %p2110_p0 = scmp.ne.s32.totalorder %s2107_s23, 0 }
  0x2e   : > { %p2111_p2 = scmp.ne.s32.totalorder (!%p2110_p0), %s2108_s24, 0 }
  0x2f   : > { %141 = sbr.rel (%p2110_p0) target bundleno = 494 (0x1ee), region = 28 }
  0x36   : > { %1564 = dma.done.wait (%p2111_p2), [#allocation3], 2048  }
  0x37   : > { %1566 = vsyncadd (%p2111_p2), [#allocation3], 4294965248  ;;  %p162_p4 = scmp.lt.s32.totalorder %s1585_s12, 1  ;;  %v1598_v0 = vmov 0   ;;  %v1599_v1 = vmov 0.0|0.0   ;;  %v184_v3 = vld [vmem:[#allocation2] sm:$0xff] }
  0x38   : > { %1482 = vset.pattern.permute.xlu0 %v1598_v0  ;;  %1289 = vmatprep.subr.bf16.mxu1 %v1599_v1  ;;  %v185_v4 = vld [vmem:[#allocation2 + $0x8] sm:$0xff]  ;;  %v201_v5 = vand.u32 4294901760, %v184_v3  ;;  %v186_v7 = vld [vmem:[#allocation2 + $0x10] sm:$0xff]  ;;  %v187_v8 = vld [vmem:[#allocation2 + $0x18] sm:$0xff]  ;;  %vm1600_vm0 = vmmov 0   ;;  %v1601_v10 = vmov 0.0  }
  0x39   : > { %s163_s20 = scalar_select %p162_p4, %s1585_s12, 1  ;;  %1265 = vmatprep.subr.bf16.mxu0 %v1599_v1  ;;  %v204_v6 = vand.u32 4294901760, %v185_v4  ;;  %v188_v9 = vld [vmem:[#allocation2 + $0x20] sm:$0xff]  ;;  %1122 = vmatprep.mubr.msk.f32.mxu1 %vm1600_vm0, %v1601_v10  ;;  %v207_v11 = vand.u32 4294901760, %v186_v7  ;;  %v210_v12 = vand.u32 4294901760, %v187_v8  ;;  %v189_v13 = vld [vmem:[#allocation2 + $0x28] sm:$0xff] }
  0x3a   : > { %v213_v14 = vand.u32 4294901760, %v188_v9  ;;  %v1721_v15 = vld [vmem:[#allocation2 + $0x30] sm:$0xff]  ;;  %v1723_v16 = vld [vmem:[#allocation2 + $0x38] sm:$0xff]  ;;  %1087 = vmatprep.mubr.msk.f32.mxu0 %vm1600_vm0, %v1601_v10  ;;  %v1727_v17 = vsub.f32 %v184_v3, %v201_v5  ;;  %v216_v19 = vand.u32 4294901760, %v189_v13  ;;  %v192_v45 = vld [vmem:[#allocation2 + $0x40] sm:$0xff]  ;;  %s159_s24 = sand.u32 1, %s1577_s10  }
  0x3b   : > { %s944_s25 = sshll.u32 %s163_s20, 3  ;;  %v1729_v18 = vsub.f32 %v185_v4, %v204_v6  ;;  %v1731_v20 = vpack.c.bf16 %v204_v6, %v201_v5  ;;  %v1733_v21 = vsub.f32 %v186_v7, %v207_v11  ;;  %v1735_v22 = vsub.f32 %v187_v8, %v210_v12  ;;  %v193_v46 = vld [vmem:[#allocation2 + $0x48] sm:$0xff]  ;;  %v1780_v51 = vld [vmem:[#allocation2 + $0x50] sm:$0xff]  ;;  %v1787_v56 = vld [vmem:[#allocation2 + $0x58] sm:$0xff]  ;;  %s943_s28 = sshll.u32 %s159_s24, 3 }
  0x3c   : > { %s165_s27 = scalar_lea.vmem %s2098_s0, %s944_s25  ;;  %v1737_v23 = vsub.f32 %v188_v9, %v213_v14  ;;  %v219_v24 = vand.u32 4294901760, %v1721_v15  ;;  %v294_v25 = vand.u32 4294901760, %v1727_v17  ;;  %v1742_v27 = vsub.f32 %v189_v13, %v216_v19  ;;  %v1789_v59 = vld [vmem:[#allocation2 + $0x60] sm:$0xff]  ;;  %v1791_v60 = vld [vmem:[#allocation2 + $0x68] sm:$0xff]  ;;  %v1804_v6 = vld [vmem:[#allocation2 + $0x70] sm:$0xff]  ;;  %s950_s29 = sshll.u32 %s1585_s12, 7 }
  0x3d   : > { %v171_v2 = vld [vmem:[%s165_s27] sm:$0xff]  ;;  %v301_v26 = vand.u32 4294901760, %v1729_v18  ;;  %1267 = vmatpush3.bf16.msra.mxu0 %v1731_v20  ;;  %v222_v28 = vand.u32 4294901760, %v1723_v16  ;;  %v308_v29 = vand.u32 4294901760, %v1733_v21  ;;  %v315_v30 = vand.u32 4294901760, %v1735_v22  ;;  %s161_s30 = scalar_lea.vmem [#allocation5], %s943_s28  ;;  %s2051_s6 = scalar_lea.hbm %s2100_s2, %s950_s29 }
  0x3e   : > { %178 = vperm.xlu0 %1482, %v171_v2   ;;  %v322_v31 = vand.u32 4294901760, %v1737_v23  ;;  %1268 = vmatprep.subr.bf16.mxu0 %v1599_v1  ;;  %v1751_v32 = vsub.f32 %v1721_v15, %v219_v24  ;;  %v295_v33 = vsub.f32 %v1727_v17, %v294_v25  ;;  %v329_v35 = vand.u32 4294901760, %v1742_v27  ;;  %s857_s3 = sshll.u32 %s161_s30, 4  ;;  %s844_s7 = scalar_lea.sflag [#allocation4], %s159_s24  ;;  %s2053_s3 = int_to_ptr.vmem [resolvable:$true] %s857_s3 }
  0x3f   : > { %v302_v34 = vsub.f32 %v1729_v18, %v301_v26  ;;  %v1761_v36 = vsub.f32 %v1723_v16, %v222_v28  ;;  %v309_v37 = vsub.f32 %v1733_v21, %v308_v29  ;;  %v316_v38 = vsub.f32 %v1735_v22, %v315_v30  ;;  %s1511_s8 = scalar_lea.vmem %s2053_s3, 128  ;;  %p2112_p10 = scmp.ne.s32.totalorder %s2105_s19, 0 }
  0x40   : > { %v323_v39 = vsub.f32 %v1737_v23, %v322_v31  ;;  %v336_v40 = vand.u32 4294901760, %v1751_v32  ;;  %v296_v41 = vand.u32 4294901760, %v295_v33  ;;  %v330_v43 = vsub.f32 %v1742_v27, %v329_v35  ;;  %p1512_p8 = scmp.ne.s32.totalorder %s2053_s3, %s1511_s8  ;;  %s1603_s12 = smov [#allocation5]  }
  0x41   : > { %v303_v42 = vand.u32 4294901760, %v302_v34  ;;  %v343_v44 = vand.u32 4294901760, %v1761_v36  ;;  %v310_v47 = vand.u32 4294901760, %v309_v37  ;;  %v317_v48 = vand.u32 4294901760, %v316_v38  ;;  %s1515_s15 = sshll.u32 %s1603_s12, 4  ;;  %s1516_s15 = int_to_ptr.vmem [resolvable:$false] %s1515_s15 }
  0x42   : > { %v324_v49 = vand.u32 4294901760, %v323_v39  ;;  %v337_v50 = vsub.f32 %v1751_v32, %v336_v40  ;;  %v331_v53 = vand.u32 4294901760, %v330_v43  ;;  %v1785_v55 = vpack.c.bf16 %v210_v12, %v207_v11  ;;  %v1811_v12 = vld [vmem:[#allocation2 + $0x78] sm:$0xff]  ;;  %p1513_p11 = pnand %p1512_p8, %p2112_p10  ;;  %s1517_s16 = scalar_lea.vmem %s1516_s15, 256 }
  0x43   : > { %v1290_v52 = vpack.c.bf16 %v303_v42, %v296_v41  ;;  %v344_v54 = vsub.f32 %v1761_v36, %v343_v44  ;;  %v225_v57 = vand.u32 4294901760, %v192_v45  ;;  %v228_v58 = vand.u32 4294901760, %v193_v46  ;;  %p1518_p1 = scmp.lt.s32.totalorder %s2053_s3, %s1516_s15  ;;  %p1519_p3 = scmp.lt.s32.totalorder %s1517_s16, %s1511_s8 }
  0x44   : > { %v1293_v61 = vpack.c.bf16 %v317_v48, %v310_v47  ;;  %v338_v62 = vand.u32 4294901760, %v337_v50  ;;  %1270 = vmatpush3.bf16.msra.mxu0 %v1785_v55  ;;  %v1794_v63 = vpack.c.bf16 %v216_v19, %v213_v14  ;;  %v231_v0 = vand.u32 4294901760, %v1780_v51  ;;  %p1514_p13 = pneg %p1513_p11 }
  0x45   : > { %1291 = vmatpush3.bf16.msra.mxu1 %v1290_v52  ;;  %v1296_v2 = vpack.c.bf16 %v331_v53, %v324_v49  ;;  %1271 = vmatprep.subr.bf16.mxu0 %v1599_v1  ;;  %v1799_v3 = vsub.f32 %v192_v45, %v225_v57  ;;  %v1801_v4 = vsub.f32 %v193_v46, %v228_v58  ;;  %v234_v5 = vand.u32 4294901760, %v1787_v56  ;;  %p1520_p5 = por %p1519_p3, %p1518_p1 }
  0x46   : > { %1292 = vmatprep.subr.bf16.mxu1 %v1599_v1  ;;  %v345_v7 = vand.u32 4294901760, %v344_v54  ;;  %v1807_v8 = vsub.f32 %v1780_v51, %v231_v0  ;;  %v237_v9 = vand.u32 4294901760, %v1789_v59  ;;  %v240_v11 = vand.u32 4294901760, %v1791_v60 }
  0x47   : > { %v350_v13 = vand.u32 4294901760, %v1799_v3  ;;  %v357_v14 = vand.u32 4294901760, %v1801_v4  ;;  %v1816_v15 = vsub.f32 %v1787_v56, %v234_v5  ;;  %v1818_v16 = vpack.c.bf16 %v222_v28, %v219_v24  ;;  %p1521_p6 = pnand %p1520_p5, %p1514_p13 }
  0x48   : > { %1273 = vmatpush3.bf16.msra.mxu0 %v1794_v63  ;;  %v364_v19 = vand.u32 4294901760, %v1807_v8  ;;  %v1823_v33 = vsub.f32 %v1789_v59, %v237_v9  ;;  %v1826_v34 = vsub.f32 %v1791_v60, %v240_v11  ;;  %v243_v37 = vand.u32 4294901760, %v1804_v6 }
  0x49   : > { %1294 = vmatpush3.bf16.msra.mxu1 %v1293_v61  ;;  %v351_v24 = vsub.f32 %v1799_v3, %v350_v13  ;;  %v358_v28 = vsub.f32 %v1801_v4, %v357_v14  ;;  %1274 = vmatprep.subr.bf16.mxu0 %v1599_v1  ;;  %v371_v38 = vand.u32 4294901760, %v1816_v15  ;;  %v246_v39 = vand.u32 4294901760, %v1811_v12 }
  0x4a   : > { %1295 = vmatprep.subr.bf16.mxu1 %v1599_v1  ;;  %v365_v41 = vsub.f32 %v1807_v8, %v364_v19  ;;  %v378_v42 = vand.u32 4294901760, %v1823_v33  ;;  %v385_v43 = vand.u32 4294901760, %v1826_v34  ;;  %v1848_v48 = vsub.f32 %v1804_v6, %v243_v37 }
  0x4b   : > { %v352_v45 = vand.u32 4294901760, %v351_v24  ;;  %v359_v46 = vand.u32 4294901760, %v358_v28  ;;  %v372_v47 = vsub.f32 %v1816_v15, %v371_v38  ;;  %v1299_v49 = vpack.c.bf16 %v345_v7, %v338_v62 }
  0x4c   : > { %1276 = vmatpush3.bf16.msra.mxu0 %v1818_v16  ;;  %v1851_v50 = vpack.c.bf16 %v228_v58, %v225_v57  ;;  %v1854_v51 = vsub.f32 %v1811_v12, %v246_v39  ;;  %v366_v52 = vand.u32 4294901760, %v365_v41  ;;  %v379_v53 = vsub.f32 %v1823_v33, %v378_v42 }
  0x4d   : > { %1297 = vmatpush3.bf16.msra.mxu1 %v1296_v2  ;;  %1277 = vmatprep.subr.bf16.mxu0 %v1599_v1  ;;  %v386_v54 = vsub.f32 %v1826_v34, %v385_v43  ;;  %v1302_v56 = vpack.c.bf16 %v359_v46, %v352_v45  ;;  %v373_v59 = vand.u32 4294901760, %v372_v47  ;;  %v392_v57 = vand.u32 4294901760, %v1848_v48 }
  0x4e   : > { %1298 = vmatprep.subr.bf16.mxu1 %v1599_v1  ;;  %v1314_v58 = vpack.c.bf16 %v1729_v18, %v1727_v17  ;;  %v399_v60 = vand.u32 4294901760, %v1854_v51  ;;  %v1869_v61 = vpack.c.bf16 %v234_v5, %v231_v0  ;;  %v1317_v62 = vpack.c.bf16 %v1735_v22, %v1733_v21 }
  0x4f   : > { %v1320_v2 = vpack.c.bf16 %v1742_v27, %v1737_v23  ;;  %v1323_v6 = vpack.c.bf16 %v1761_v36, %v1751_v32  ;;  %v1326_v7 = vpack.c.bf16 %v1801_v4, %v1799_v3  ;;  %v380_v12 = vand.u32 4294901760, %v379_v53 }
  0x50   : > { %1279 = vmatpush3.bf16.msra.mxu0 %v1851_v50  ;;  %v393_v0 = vsub.f32 %v1848_v48, %v392_v57  ;;  %v1305_v5 = vpack.c.bf16 %v373_v59, %v366_v52  ;;  %v387_v24 = vand.u32 4294901760, %v386_v54  ;;  %v400_v28 = vsub.f32 %v1854_v51, %v399_v60 }
  0x51   : > { %1300 = vmatpush3.bf16.msra.mxu1 %v1299_v49  ;;  %1280 = vmatprep.subr.bf16.mxu0 %v1599_v1  ;;  %v1884_v41 = vpack.c.bf16 %v240_v11, %v237_v9  ;;  %v1329_v45 = vpack.c.bf16 %v1816_v15, %v1807_v8  ;;  %v1891_v52 = vpack.c.bf16 %v246_v39, %v243_v37 }
  0x52   : > { %1301 = vmatprep.subr.bf16.mxu1 %v1599_v1  ;;  %v1308_v46 = vpack.c.bf16 %v387_v24, %v380_v12  ;;  %v394_v47 = vand.u32 4294901760, %v393_v0  ;;  %v401_v49 = vand.u32 4294901760, %v400_v28  ;;  %v1332_v9 = vpack.c.bf16 %v1826_v34, %v1823_v33 }
  0x53   : > { %v1335_v53 = vpack.c.bf16 %v1854_v51, %v1848_v48  ;;  %v1362_v37 = vpack.c.bf16 %v301_v26, %v294_v25  ;;  %v1911_v39 = vpack.c.bf16 %v315_v30, %v308_v29  ;;  %v1917_v54 = vpack.c.bf16 %v329_v35, %v322_v31 }
  0x54   : > { %1282 = vmatpush3.bf16.msra.mxu0 %v1869_v61  ;;  %v1311_v11 = vpack.c.bf16 %v401_v49, %v394_v47  ;;  %v1923_v48 = vpack.c.bf16 %v343_v44, %v336_v40  ;;  %v1929_v25 = vpack.c.bf16 %v357_v14, %v350_v13  ;;  %v1935_v26 = vpack.c.bf16 %v371_v38, %v364_v19 }
  0x55   : > { %1303 = vmatpush3.bf16.msra.mxu1 %v1302_v56  ;;  %1283 = vmatprep.subr.bf16.mxu0 %v1599_v1  ;;  %v1941_v29 = vpack.c.bf16 %v385_v43, %v378_v42  ;;  %v1943_v30 = vpack.c.bf16 %v399_v60, %v392_v57  ;;  %v173_v31 = vlaneseq  ;;  %v1602_v13 = vmov 1.0  }
  0x56   : > { %1304 = vmatprep.subr.bf16.mxu1 %v1599_v1 }
  0x57   : > { %v1945_v35 = vand.u32 127, %v173_v31 }
  0x58   : > { %1285 = vmatpush3.bf16.msra.mxu0 %v1884_v41 }
  0x59   : > { %1306 = vmatpush3.bf16.msra.mxu1 %v1305_v5  ;;  %1286 = vmatprep.subr.bf16.mxu0 %v1599_v1 }
  0x5a   : > { %1307 = vmatprep.subr.bf16.mxu1 %v1599_v1 }
  0x5c   : > { %1288 = vmatpush3.bf16.msra.mxu0 %v1891_v52 }
  0x5d   : > { %1309 = vmatpush3.bf16.msra.mxu1 %v1308_v46  ;;  %1313 = vmatprep.subr.bf16.mxu0 %v1599_v1 }
  0x5e   : > { %1310 = vmatprep.subr.bf16.mxu1 %v1599_v1 }
  0x61   : > { %1312 = vmatpush3.bf16.msra.mxu1 %v1311_v11 }
  0x62   : > { %1337 = vmatprep.subr.bf16.mxu1 %v1599_v1 }
  0xbd   : > { %v1947_v40 = vpop.permute.xlu0 %178 }
  0xbe   : > { %vm180_vm1 = vcmp.eq.s32.totalorder %v1945_v35, %v1947_v40 }
  0xbf   : > { %v945_v44 = vsel %vm180_vm1, 1.0, %v1601_v10  ;;  %1123 = vmatmul.mubr.msk.f32.vlgmr.msra.gmra.mrb[0].mxu1 %vm180_vm1, %v1602_v13 }
  0xc0   : > { %v282_v14 = vsub.f32 %v945_v44, %v945_v44  ;;  %1339 = vmatpush3.bf16.msra.mxu1 %v1731_v20  ;;  %1192 = vmatprep.mubr.msk.f32.mxu1 %vm1600_vm0, %v1601_v10 }
  0xc1   : > { %1340 = vmatprep.subr.bf16.mxu1 %v1599_v1 }
  0xc2   : > { %v283_v19 = vand.u32 4294901760, %v282_v14 }
  0xc4   : > { %1342 = vmatpush3.bf16.msra.mxu1 %v1785_v55  ;;  %v284_v33 = vsub.f32 %v282_v14, %v283_v19 }
  0xc5   : > { %1343 = vmatprep.subr.bf16.mxu1 %v1599_v1 }
  0xc6   : > { %v285_v34 = vand.u32 4294901760, %v284_v33 }
  0xc8   : > { %1345 = vmatpush3.bf16.msra.mxu1 %v1794_v63  ;;  %1088 = vmatmul.mubr.f32.vlgmr.msra.gmra.mrb[0].mxu0 %v285_v34 }
  0xc9   : > { %1315 = vmatpush3.bf16.msra.mxu0 %v1314_v58  ;;  %1346 = vmatprep.subr.bf16.mxu1 %v1599_v1 }
  0xca   : > { %1316 = vmatprep.subr.bf16.mxu0 %v1599_v1  ;;  %1157 = vmatprep.mubr.msk.f32.mxu0 %vm1600_vm0, %v1601_v10 }
  0xcc   : > { %1348 = vmatpush3.bf16.msra.mxu1 %v1818_v16 }
  0xcd   : > { %1318 = vmatpush3.bf16.msra.mxu0 %v1317_v62  ;;  %1349 = vmatprep.subr.bf16.mxu1 %v1599_v1 }
  0xce   : > { %1319 = vmatprep.subr.bf16.mxu0 %v1599_v1 }
  0xd0   : > { %1351 = vmatpush3.bf16.msra.mxu1 %v1851_v50 }
  0xd1   : > { %1321 = vmatpush3.bf16.msra.mxu0 %v1320_v2  ;;  %1352 = vmatprep.subr.bf16.mxu1 %v1599_v1 }
  0xd2   : > { %1322 = vmatprep.subr.bf16.mxu0 %v1599_v1 }
  0xd4   : > { %1354 = vmatpush3.bf16.msra.mxu1 %v1869_v61 }
  0xd5   : > { %1324 = vmatpush3.bf16.msra.mxu0 %v1323_v6  ;;  %1355 = vmatprep.subr.bf16.mxu1 %v1599_v1 }
  0xd6   : > { %1325 = vmatprep.subr.bf16.mxu0 %v1599_v1 }
  0xd8   : > { %1357 = vmatpush3.bf16.msra.mxu1 %v1884_v41 }
  0xd9   : > { %1327 = vmatpush3.bf16.msra.mxu0 %v1326_v7  ;;  %1358 = vmatprep.subr.bf16.mxu1 %v1599_v1 }
  0xda   : > { %1328 = vmatprep.subr.bf16.mxu0 %v1599_v1 }
  0xdc   : > { %1360 = vmatpush3.bf16.msra.mxu1 %v1891_v52 }
  0xdd   : > { %1330 = vmatpush3.bf16.msra.mxu0 %v1329_v45  ;;  %1385 = vmatprep.subr.bf16.mxu1 %v1599_v1 }
  0xde   : > { %1331 = vmatprep.subr.bf16.mxu0 %v1599_v1 }
  0xdf   : > { %1193 = vmatmul.mubr.f32.vlgmr.msra.gmra.mrb[2].mxu1 %v283_v19 }
  0xe0   : > { %1387 = vmatpush3.bf16.msra.mxu1 %v1731_v20  ;;  %1262 = vmatprep.mubr.msk.f32.mxu1 %vm1600_vm0, %v1601_v10 }
  0xe1   : > { %1333 = vmatpush3.bf16.msra.mxu0 %v1332_v9  ;;  %1388 = vmatprep.subr.bf16.mxu1 %v1599_v1 }
  0xe2   : > { %1334 = vmatprep.subr.bf16.mxu0 %v1599_v1 }
  0xe4   : > { %1390 = vmatpush3.bf16.msra.mxu1 %v1785_v55 }
  0xe5   : > { %1336 = vmatpush3.bf16.msra.mxu0 %v1335_v53  ;;  %1391 = vmatprep.subr.bf16.mxu1 %v1599_v1 }
  0xe6   : > { %1361 = vmatprep.subr.bf16.mxu0 %v1599_v1 }
  0xe8   : > { %1158 = vmatmul.mubr.f32.vlgmr.msra.gmra.mrb[2].mxu0 %v282_v14  ;;  %1393 = vmatpush3.bf16.msra.mxu1 %v1794_v63 }
  0xe9   : > { %1363 = vmatpush3.bf16.msra.mxu0 %v1362_v37  ;;  %1394 = vmatprep.subr.bf16.mxu1 %v1599_v1 }
  0xea   : > { %1364 = vmatprep.subr.bf16.mxu0 %v1599_v1  ;;  %1227 = vmatprep.mubr.msk.f32.mxu0 %vm1600_vm0, %v1601_v10 }
  0xec   : > { %1396 = vmatpush3.bf16.msra.mxu1 %v1818_v16 }
  0xed   : > { %1366 = vmatpush3.bf16.msra.mxu0 %v1911_v39  ;;  %1397 = vmatprep.subr.bf16.mxu1 %v1599_v1 }
  0xee   : > { %1367 = vmatprep.subr.bf16.mxu0 %v1599_v1 }
  0xf0   : > { %1399 = vmatpush3.bf16.msra.mxu1 %v1851_v50 }
  0xf1   : > { %1369 = vmatpush3.bf16.msra.mxu0 %v1917_v54  ;;  %1400 = vmatprep.subr.bf16.mxu1 %v1599_v1 }
  0xf2   : > { %1370 = vmatprep.subr.bf16.mxu0 %v1599_v1 }
  0xf4   : > { %1402 = vmatpush3.bf16.msra.mxu1 %v1869_v61 }
  0xf5   : > { %1372 = vmatpush3.bf16.msra.mxu0 %v1923_v48  ;;  %1403 = vmatprep.subr.bf16.mxu1 %v1599_v1 }
  0xf6   : > { %1373 = vmatprep.subr.bf16.mxu0 %v1599_v1 }
  0xf8   : > { %1405 = vmatpush3.bf16.msra.mxu1 %v1884_v41 }
  0xf9   : > { %1375 = vmatpush3.bf16.msra.mxu0 %v1929_v25  ;;  %1406 = vmatprep.subr.bf16.mxu1 %v1599_v1 }
  0xfa   : > { %1376 = vmatprep.subr.bf16.mxu0 %v1599_v1 }
  0xfc   : > { %1408 = vmatpush3.bf16.msra.mxu1 %v1891_v52 }
  0xfd   : > { %1378 = vmatpush3.bf16.msra.mxu0 %v1935_v26 }
  0xfe   : > { %1379 = vmatprep.subr.bf16.mxu0 %v1599_v1 }
  0xff   : > { %1263 = vmatmul.mubr.msk.f32.vlgmr.msra.gmra.mrb[4].mxu1 %vm180_vm1, %v1602_v13 }
 0x101   : > { %1381 = vmatpush3.bf16.msra.mxu0 %v1941_v29 }
 0x102   : > { %1382 = vmatprep.subr.bf16.mxu0 %v1599_v1 }
 0x105   : > { %1384 = vmatpush3.bf16.msra.mxu0 %v1943_v30 }
 0x108   : > { %1228 = vmatmul.mubr.msk.f32.vlgmr.msra.gmra.mrb[4].mxu0 %vm180_vm1, %v1602_v13 }
 0x192   : > { %v438_v10 = vpop.f32.mrb[0].mxu1 }
 0x193   : > { %v1124_v17 = vpop.f32.mrb[1].mxu1 }
 0x19b   : > { %v287_v18 = vpop.f32.mrb[0].mxu0 }
 0x19c   : > { %v439_v20 = vadd.f32 %v438_v10, %v287_v18  ;;  %v1089_v21 = vpop.f32.mrb[1].mxu0 }
 0x1b2   : > { %v631_v22 = vpop.f32.mrb[2].mxu1 }
 0x1b3   : > { %v1194_v23 = vpop.f32.mrb[3].mxu1 }
 0x1bb   : > { %v542_v27 = vpop.f32.mrb[2].mxu0 }
 0x1bc   : > { %v543_v32 = vadd.f32 %v542_v27, %v439_v20  ;;  %v1159_v36 = vpop.f32.mrb[3].mxu0 }
 0x1be   : > { %v632_v1 = vadd.f32 %v631_v22, %v543_v32 }
 0x1d2   : > { %v837_v55 = vpop.f32.mrb[4].mxu1 }
 0x1d3   : > { %v1264_v63 = vpop.f32.mrb[5].mxu1 }
 0x1db   : > { %v750_v3 = vpop.f32.mrb[4].mxu0 }
 0x1dc   : > { %v751_v4 = vadd.f32 %v750_v3, %v632_v1  ;;  %v1229_v8 = vpop.f32.mrb[5].mxu0 }
 0x1de   : > { %v838_v15 = vadd.f32 %v837_v55, %v751_v4 }
 0x1e0   : > { %842 = vst [vmem:[%s161_s30] sm:$0xff] %v838_v15 }
 0x1e1   : > { %1524 = shalt.err (!%p1521_p6)
}
 0x1e2   : > { %s1525_s18 = scalar_lea.hbm %s2051_s6, 128  ;;  %s1529_s23 = scalar_lea.hbm %s2100_s2, 256 }
 0x1e3   : > { %p1526_p7 = scmp.ne.s32.totalorder %s2051_s6, %s1525_s18  ;;  %p1530_p0 = scmp.lt.u32.totalorder %s2051_s6, %s2100_s2 }
 0x1e4   : > { %p1531_p2 = scmp.lt.u32.totalorder %s1529_s23, %s1525_s18  ;;  %p1533_p8 = scmp.lt.u32.totalorder %s1525_s18, %s2051_s6 }
 0x1e5   : > { %p1527_p9 = pnand %p1526_p7, %p2112_p10 }
 0x1e6   : > { %p1532_p4 = por %p1531_p2, %p1530_p0 }
 0x1e7   : > { %p1528_p12 = pneg %p1527_p9 }
 0x1e8   : > { %p1534_p11 = por %p1533_p8, %p1532_p4 }
 0x1ea   : > { %p1535_p13 = pnand %p1534_p11, %p1528_p12 }
 0x1ec   : > { %1538 = shalt.err (!%p1535_p13)
}
 0x1ed   : > { %1413 = dma.vmem_to_hbm [thread:$0]  (%p2112_p10), %s2053_s3, 128, %s2051_s6, %s844_s7  }
 0x1ee PF: > { %p1425_p1 = scmp.ge.s32.totalorder %s1593_s14, 2  ;;  %s869_s24 = sand.u32 1, %s1573_s9  }
 0x1ef   : > { %p2113_p3 = scmp.ne.s32.totalorder %s2106_s21, 0  ;;  %s870_s28 = scalar_lea.sflag [#allocation4], %s869_s24 }
 0x1f1   : > { %p1420_p5 = pnand %p1425_p1, %p2113_p3 }
 0x1f3   : > { %1568 = dma.done.wait (!%p1420_p5), %s870_s28, 128  }
 0x1f4   : > { %1570 = vsyncadd (!%p1420_p5), %s870_s28, 4294967168  ;;  %s16_s14 = sadd.s32 1, %s1593_s14   ;;  %s2114_s9 = smov %s1577_s10 }
 0x1f5   : > { %p13_p6 = scmp.ge.s32.totalorder %s16_s14, 4   ;;  %s2115_s10 = smov %s1581_s11 }
 0x1f6   : > { %s2116_s11 = smov %s1672_s22  ;;  %s2117_s12 = smov %s1589_s13 }
 0x1f7   : > { %s2118_s13 = smov %s2120_s17  ;;  %15 = sbr.rel (!%p13_p6) target bundleno = 5 (0x5), region = 72 }
 0x1fe   :  { %875 = vsyncpa [#allocation3], 1 }
 0x1ff   :  { %877 = vsyncpa [#allocation3 + $0x1], 1 }
 0x200   :  { %878 = vsyncpa [#allocation4], 1 }
 0x201   :  { %880 = vsyncpa [#allocation4 + $0x1], 1 }

</bundles_post_ra>
